<compile_context>
chip_gen: v6e
topology: v6e:2x2x1
jax: 0.10.0
libtpu: 0.0.40
codegen_flags: <defaults>
</compile_context>

<pallas_src>
import functools

import jax
import jax.numpy as jnp
from jax.experimental import pallas as pl
from jax.experimental.pallas import tpu as pltpu


def _round_up(x, m):
    return ((x + m - 1) // m) * m


def _pick_tile(n_pad, target):
    """Largest multiple of 128 that divides n_pad and is <= max(target, 128)."""
    t = min(n_pad, max(128, (target // 128) * 128))
    while n_pad % t != 0:
        t -= 128
    return t


@functools.lru_cache(maxsize=None)
def _vmem_budget_bytes():
    """Per-chip VMEM budget with ~10% headroom for Mosaic internal scratch."""
    try:
        cap = pltpu.get_tpu_info().vmem_capacity_bytes
    except Exception:
        cap = 64 * 1024 * 1024          # conservative fallback (v7x-sized)
    return int(cap * 0.9)


def _propagate_tiles(m_pad, k_pad, d_pad):
    """Pick G tile sizes and decide resident-vs-streamed normalized E."""
    budget = _vmem_budget_bytes()
    tk = _pick_tile(k_pad, 2048)
    tm = _pick_tile(m_pad, 512)

    def usage(tm_, tk_, resident_):
        g = 2 * tm_ * tk_ * 2            # double-buffered bf16 G tile
        out = 2 * tm_ * d_pad * 4        # f32 output / accumulator tile
        extra = 2 * 2 * tm_ * d_pad * 4  # e0 + prop_sum tiles (final-layer variant)
        p = (2 * k_pad * d_pad * 2) if resident_ else (2 * tk_ * d_pad * 2)
        return g + out + extra + p

    resident = usage(tm, tk, True) <= budget
    # Streaming fallback: shrink the G tile until the streamed variant fits.
    while (not resident) and usage(tm, tk, False) > budget and (tm > 128 or tk > 128):
        if tk > 128:
            tk = _pick_tile(k_pad, tk - 128)
        elif tm > 128:
            tm = _pick_tile(m_pad, tm - 128)
    return tm, tk, resident


# ---------------------------------------------------------------------------
# Kernel 1: row L2-normalize (torch.norm + 1e-12 semantics) -> bf16 copy
# ---------------------------------------------------------------------------
def _normalize_kernel(e_ref, p_ref):
    e = e_ref[...]
    ss = jnp.sum(e * e, axis=1, keepdims=True)
    inv = 1.0 / (jnp.sqrt(ss) + 1e-12)          # matches torch eps; zero rows -> 0
    p_ref[...] = (e * inv).astype(p_ref.dtype)


def normalize_rows_bf16(e):
    R, D_pad = e.shape
    tr = _pick_tile(R, 1024)
    return pl.pallas_call(
        _normalize_kernel,
        out_shape=jax.ShapeDtypeStruct((R, D_pad), jnp.bfloat16),
        grid_spec=pltpu.PrefetchScalarGridSpec(
            num_scalar_prefetch=0,
            grid=(R // tr,),
            in_specs=[pl.BlockSpec((tr, D_pad), lambda i: (i, 0))],
            out_specs=pl.BlockSpec((tr, D_pad), lambda i: (i, 0)),
        ),
        compiler_params=pltpu.CompilerParams(
            dimension_semantics=("parallel",),
            vmem_limit_bytes=_vmem_budget_bytes(),
        ),
    )(e)


# ---------------------------------------------------------------------------
# Kernel 2: rectangular propagation  O = G_quad @ P   (P pre-normalized bf16)
#   grid = (row blocks of G, k reduction). Output block stays resident across
#   k and doubles as the f32 accumulator. k==0 writes the product directly.
# ---------------------------------------------------------------------------
def _propagate_kernel(g_ref, p_ref, o_ref, *, tk, resident):
    k = pl.program_id(1)
    if resident:
        start = pl.multiple_of(k * tk, 128)
        p = p_ref[pl.ds(start, tk), :]
    else:
        p = p_ref[...]
    prod = jnp.dot(g_ref[...], p, preferred_element_type=jnp.float32)

    @pl.when(k == 0)
    def _():
        o_ref[...] = prod

    @pl.when(k > 0)
    def _():
        o_ref[...] += prod


def _propagate_final_kernel(g_ref, p_ref, e0_ref, sum_ref, o_ref, *,
                            tk, resident, gamma, inv_layers):
    """Last layer: fuse  gamma*e0 + (1-gamma)/L * (prop_sum + G@P)  into the
    k==last epilogue (no separate combine pass / kernel launch)."""
    k = pl.program_id(1)
    nk = pl.num_programs(1)
    if resident:
        start = pl.multiple_of(k * tk, 128)
        p = p_ref[pl.ds(start, tk), :]
    else:
        p = p_ref[...]
    prod = jnp.dot(g_ref[...], p, preferred_element_type=jnp.float32)

    @pl.when(k == 0)
    def _():
        o_ref[...] = prod

    @pl.when(k > 0)
    def _():
        o_ref[...] += prod

    @pl.when(k == nk - 1)
    def _():
        acc = o_ref[...]
        o_ref[...] = (gamma * e0_ref[...]
                      + ((1.0 - gamma) * inv_layers) * (sum_ref[...] + acc))


def _propagate_call(kernel_fn, g, p, extra_inputs=()):
    M_pad, K_pad = g.shape
    D_pad = p.shape[1]
    tm, tk, resident = _propagate_tiles(M_pad, K_pad, D_pad)
    kernel = functools.partial(kernel_fn, tk=tk, resident=resident)

    if resident:
        # Constant block index -> fetched once, stays resident across the grid.
        p_spec = pl.BlockSpec((K_pad, D_pad), lambda i, k: (0, 0))
    else:
        # Streaming fallback (adds ~D_pad/tm extra HBM traffic, always fits).
        p_spec = pl.BlockSpec((tk, D_pad), lambda i, k: (k, 0))

    extra_specs = [pl.BlockSpec((tm, D_pad), lambda i, k: (i, 0))
                   for _ in extra_inputs]

    return pl.pallas_call(
        kernel,
        out_shape=jax.ShapeDtypeStruct((M_pad, D_pad), jnp.float32),
        grid_spec=pltpu.PrefetchScalarGridSpec(
            num_scalar_prefetch=0,
            grid=(M_pad // tm, K_pad // tk),
            in_specs=[pl.BlockSpec((tm, tk), lambda i, k: (i, k)),   # stream G
                      p_spec] + extra_specs,
            out_specs=pl.BlockSpec((tm, D_pad), lambda i, k: (i, 0)),
        ),
        compiler_params=pltpu.CompilerParams(
            dimension_semantics=("parallel", "arbitrary"),
            vmem_limit_bytes=_vmem_budget_bytes(),
        ),
    )(g, p, *extra_inputs)


def graph_propagate(g, p):
    return _propagate_call(_propagate_kernel, g, p)


def graph_propagate_final(g, p, e0, prop_sum, *, gamma, n_layers):
    kernel = functools.partial(_propagate_final_kernel,
                               gamma=float(gamma),
                               inv_layers=1.0 / float(n_layers))
    return _propagate_call(kernel, g, p, extra_inputs=(e0, prop_sum))


# ---------------------------------------------------------------------------
# Graph preparation (hoisted OUT of the jitted forward; called once at setup).
# Exploits the bipartite structure: only the two nonzero quadrants are kept,
# cast to bf16 BEFORE padding (no padded f32 copy of G is ever materialized).
# ---------------------------------------------------------------------------
def prepare_graph(G, n_users, m_items):
    N = n_users + m_items
    assert G.shape == (N, N)
    U_pad = _round_up(n_users, 128)
    I_pad = _round_up(m_items, 128)
    g_ui = G[:n_users, n_users:].astype(jnp.bfloat16)   # users x items quadrant
    g_iu = G[n_users:, :n_users].astype(jnp.bfloat16)   # items x users quadrant
    g_ui_p = jnp.zeros((U_pad, I_pad), jnp.bfloat16).at[:n_users, :m_items].set(g_ui)
    g_iu_p = jnp.zeros((I_pad, U_pad), jnp.bfloat16).at[:m_items, :n_users].set(g_iu)
    return g_ui_p, g_iu_p


# ---------------------------------------------------------------------------
# Full forward (glue in plain JAX: small pads / index-gather / tiny score)
# ---------------------------------------------------------------------------
def lightgcn_forward(user_emb, item_emb, g_ui, g_iu, users, items, *,
                     n_layers, gamma):
    assert n_layers >= 1
    n_users, D = user_emb.shape
    m_items = item_emb.shape[0]
    U_pad, I_pad = g_ui.shape
    D_pad = _round_up(D, 128)

    # Pad embeddings to lane-dense feature dim / tileable node dims.
    e0_u = jnp.zeros((U_pad, D_pad), jnp.float32).at[:n_users, :D].set(
        user_emb.astype(jnp.float32))
    e0_i = jnp.zeros((I_pad, D_pad), jnp.float32).at[:m_items, :D].set(
        item_emb.astype(jnp.float32))

    eu, ei = e0_u, e0_i
    sum_u = jnp.zeros_like(e0_u)
    sum_i = jnp.zeros_like(e0_i)
    light_u = light_i = None

    for layer in range(n_layers):
        last = layer == n_layers - 1
        # Per-layer pre-normalization (bf16) - done once, reused by both sides.
        pu = normalize_rows_bf16(eu)                     # (U_pad, D_pad) bf16
        pi = normalize_rows_bf16(ei)                     # (I_pad, D_pad) bf16
        if not last:
            eu = graph_propagate(g_ui, pi)               # users <- items
            ei = graph_propagate(g_iu, pu)               # items <- users
            sum_u = sum_u + eu                           # tiny; XLA fuses
            sum_i = sum_i + ei
        else:
            # Final layer: gamma-combine fused into the matmul epilogue.
            light_u = graph_propagate_final(g_ui, pi, e0_u, sum_u,
                                            gamma=gamma, n_layers=n_layers)
            light_i = graph_propagate_final(g_iu, pu, e0_i, sum_i,
                                            gamma=gamma, n_layers=n_layers)

    # Tiny per-pair score: plain JAX (a (B, 1) Pallas kernel is lane-sparse and
    # only adds launch overhead).
    u = light_u[:n_users, :D][users]
    it = light_i[:m_items, :D][items]
    return jnp.sum(u * it, axis=1)


# ---------------------------------------------------------------------------
# References
# ---------------------------------------------------------------------------
def lightgcn_forward_ref_f32(user_emb, item_emb, G, users, items, *,
                             n_layers, gamma):
    """Exact f32 math of the PyTorch module."""
    n_users = user_emb.shape[0]
    e0 = jnp.concatenate([user_emb, item_emb], axis=0)
    e = e0
    props = []
    for _ in range(n_layers):
        norm = jnp.linalg.norm(e, axis=1) + 1e-12
        e = G @ (e / norm[:, None])
        props.append(e)
    mean_prop = jnp.mean(jnp.stack(props, axis=0), axis=0)
    light_out = gamma * e0 + (1.0 - gamma) * mean_prop
    u = light_out[:n_users][users]
    i = light_out[n_users:][items]
    return jnp.sum(u * i, axis=1)


def lightgcn_forward_ref_bf16(user_emb, item_emb, G, users, items, *,
                              n_layers, gamma):
    """Mirrors the kernel numerics (bf16 G / bf16 normalized E, f32 accumulate).
    The bipartite split is mathematically identical to full G @ E because the
    skipped quadrants are exactly zero."""
    n_users = user_emb.shape[0]
    e0 = jnp.concatenate([user_emb, item_emb], axis=0).astype(jnp.float32)
    G_bf = G.astype(jnp.bfloat16)
    e = e0
    prop_sum = jnp.zeros_like(e0)
    for _ in range(n_layers):
        ss = jnp.sum(e * e, axis=1, keepdims=True)
        p = (e * (1.0 / (jnp.sqrt(ss) + 1e-12))).astype(jnp.bfloat16)
        e = jnp.dot(G_bf, p, preferred_element_type=jnp.float32)
        prop_sum = prop_sum + e
    light_out = gamma * e0 + (1.0 - gamma) * (prop_sum / n_layers)
    u = light_out[:n_users][users]
    i = light_out[n_users:][items]
    return jnp.sum(u * i, axis=1)


if __name__ == "__main__":
    # Small deterministic config (stands in for dataset/config of LightGCN).
    n_users, m_items = 48, 80            # N = 128
    latent_dim = 32
    n_layers = 3
    gamma = 0.5
    N = n_users + m_items
    B = 8

    key = jax.random.PRNGKey(0)
    k1, k2, k3, k4, k5 = jax.random.split(key, 5)

    # nn.init.normal_(std=0.1) embeddings, deterministic.
    user_emb = 0.1 * jax.random.normal(k1, (n_users, latent_dim), jnp.float32)
    item_emb = 0.1 * jax.random.normal(k2, (m_items, latent_dim), jnp.float32)

    # Synthetic symmetric-normalized bipartite adjacency (dense stand-in for
    # dataset.getSparseGraph().to_dense(); user-user / item-item blocks zero).
    mask = (jax.random.uniform(k3, (n_users, m_items)) < 0.15).astype(jnp.float32)
    A = jnp.zeros((N, N), jnp.float32)
    A = A.at[:n_users, n_users:].set(mask)
    A = A.at[n_users:, :n_users].set(mask.T)
    deg = jnp.sum(A, axis=1)
    d_inv_sqrt = jnp.where(deg > 0, 1.0 / jnp.sqrt(jnp.maximum(deg, 1e-12)), 0.0)
    G = d_inv_sqrt[:, None] * A * d_inv_sqrt[None, :]

    users = jax.random.randint(k4, (B,), 0, n_users)
    items = jax.random.randint(k5, (B,), 0, m_items)

    # TODO(synk): sparse-COO dropout (__dropout_x) is training-only and has no
    # clean dense-Pallas equivalent; the eval path (no dropout) is implemented.

    # Hoisted graph preparation: quadrant slice -> bf16 cast -> pad, done ONCE.
    g_ui, g_iu = prepare_graph(G, n_users, m_items)
    g_ui = jax.block_until_ready(g_ui)
    g_iu = jax.block_until_ready(g_iu)

    fwd = jax.jit(functools.partial(lightgcn_forward,
                                    n_layers=n_layers, gamma=gamma))
    scores = jax.block_until_ready(fwd(user_emb, item_emb, g_ui, g_iu,
                                       users, items))
    assert scores.shape == (B,)

    # Tight check against a reference that mirrors the kernel numerics.
    ref_bf16 = lightgcn_forward_ref_bf16(user_emb, item_emb, G, users, items,
                                         n_layers=n_layers, gamma=gamma)
    assert jnp.allclose(scores, ref_bf16, rtol=1e-3, atol=1e-4), (scores, ref_bf16)

    # Loose sanity check against the full-f32 PyTorch-equivalent math
    # (G streamed as bf16 => small expected drift on the scores).
    ref_f32 = lightgcn_forward_ref_f32(user_emb, item_emb, G, users, items,
                                       n_layers=n_layers, gamma=gamma)
    assert jnp.allclose(scores, ref_f32, rtol=2e-2, atol=2e-2), (scores, ref_f32)

    print("KERNEL_OK")
</pallas_src>

<mosaic_0001>
module attributes {stable_mosaic.version = 11 : i64} {
  func.func @_normalize_kernel(%arg0: i32, %arg1: memref<128x128xf32, #tpu.memory_space<vmem>>, %arg2: memref<128x128xbf16, #tpu.memory_space<vmem>>) attributes {dimension_semantics = [#tpu.dimension_semantics<parallel>], iteration_bounds = array<i64: 1>, scalar_prefetch = 0 : i64, scratch_operands = 0 : i64, tpu.core_type = #tpu.core_type<tc>, window_params = [{transform_indices = @transform_0, window_bounds = array<i64: 128, 128>}, {transform_indices = @transform_1, window_bounds = array<i64: 128, 128>}]} {
    %c0 = arith.constant 0 : index
    %c0_0 = arith.constant 0 : index
    %0 = vector.load %arg1[%c0, %c0_0] : memref<128x128xf32, #tpu.memory_space<vmem>>, vector<128x128xf32>
    %1 = arith.mulf %0, %0 : vector<128x128xf32>
    %cst = arith.constant dense<0.000000e+00> : vector<128xf32>
    %2 = vector.multi_reduction <add>, %1, %cst [1] : vector<128x128xf32> to vector<128xf32>
    %3 = vector.shape_cast %2 : vector<128xf32> to vector<128x1xf32>
    %4 = math.sqrt %3 : vector<128x1xf32>
    %cst_1 = arith.constant 9.99999996E-13 : f32
    %5 = vector.broadcast %cst_1 : f32 to vector<128x1xf32>
    %6 = arith.addf %4, %5 : vector<128x1xf32>
    %cst_2 = arith.constant 1.000000e+00 : f32
    %7 = vector.broadcast %cst_2 : f32 to vector<128x1xf32>
    %8 = arith.divf %7, %6 : vector<128x1xf32>
    %9 = vector.broadcast %8 : vector<128x1xf32> to vector<128x128xf32>
    %10 = arith.mulf %0, %9 : vector<128x128xf32>
    %11 = arith.truncf %10 : vector<128x128xf32> to vector<128x128xbf16>
    %c0_3 = arith.constant 0 : index
    %c0_4 = arith.constant 0 : index
    %12 = vector.load %arg2[%c0_3, %c0_4] : memref<128x128xbf16, #tpu.memory_space<vmem>>, vector<128x128xbf16>
    tpu.vector_store %arg2[%c0_3, %c0_4], %11 {strides = array<i32>} : memref<128x128xbf16, #tpu.memory_space<vmem>>, vector<128x128xbf16>,
    return
  }
  func.func @transform_0(%arg0: i32) -> (i32, i32) {
    %c0_i32 = arith.constant 0 : i32
    %c0_i32_0 = arith.constant 0 : i32
    return %arg0, %c0_i32 : i32, i32
  }
  func.func @transform_1(%arg0: i32) -> (i32, i32) {
    %c0_i32 = arith.constant 0 : i32
    %c0_i32_0 = arith.constant 0 : i32
    return %arg0, %c0_i32 : i32, i32
  }
}

module attributes {stable_mosaic.version = 11 : i64} {
  func.func @_propagate_kernel(%arg0: i32, %arg1: i32, %arg2: memref<128x128xbf16, #tpu.memory_space<vmem>>, %arg3: memref<128x128xbf16, #tpu.memory_space<vmem>>, %arg4: memref<128x128xf32, #tpu.memory_space<vmem>>) attributes {dimension_semantics = [#tpu.dimension_semantics<parallel>, #tpu.dimension_semantics<arbitrary>], iteration_bounds = array<i64: 1, 1>, scalar_prefetch = 0 : i64, scratch_operands = 0 : i64, tpu.core_type = #tpu.core_type<tc>, window_params = [{transform_indices = @transform_0, window_bounds = array<i64: 128, 128>}, {pipeline_mode = #tpu.pipeline_mode<synchronous>, transform_indices = @transform_1, window_bounds = array<i64: 128, 128>}, {transform_indices = @transform_2, window_bounds = array<i64: 128, 128>}]} {
    %c128_i32 = arith.constant 128 : i32
    %0 = arith.muli %arg1, %c128_i32 : i32
    %1 = tpu.assume_multiple %0, 128 : i32
    %2 = arith.index_cast %1 : i32 to index
    %c0 = arith.constant 0 : index
    %3 = vector.load %arg3[%2, %c0] : memref<128x128xbf16, #tpu.memory_space<vmem>>, vector<128x128xbf16>
    %c0_0 = arith.constant 0 : index
    %c0_1 = arith.constant 0 : index
    %4 = vector.load %arg2[%c0_0, %c0_1] : memref<128x128xbf16, #tpu.memory_space<vmem>>, vector<128x128xbf16>
    %cst = arith.constant dense<0.000000e+00> : vector<128x128xf32>
    %5 = tpu.matmul %4, %3, %cst {dimension_numbers = #tpu.dot_dimension_numbers<[1], [0], [0], [1], [0, 0, 1, 1], [], []>} : vector<128x128xbf16>, vector<128x128xbf16>, vector<128x128xf32> -> vector<128x128xf32>
    %c0_i32 = arith.constant 0 : i32
    %6 = arith.cmpi eq, %arg1, %c0_i32 : i32
    %7 = arith.extui %6 : i1 to i32
    %c0_i32_2 = arith.constant 0 : i32
    %8 = arith.cmpi ne, %7, %c0_i32_2 : i32
    scf.if %8 {
      %c0_5 = arith.constant 0 : index
      %c0_6 = arith.constant 0 : index
      %12 = vector.load %arg4[%c0_5, %c0_6] : memref<128x128xf32, #tpu.memory_space<vmem>>, vector<128x128xf32>
      tpu.vector_store %arg4[%c0_5, %c0_6], %5 {strides = array<i32>} : memref<128x128xf32, #tpu.memory_space<vmem>>, vector<128x128xf32>,
    } else {
    }
    %c0_i32_3 = arith.constant 0 : i32
    %9 = arith.cmpi sgt, %arg1, %c0_i32_3 : i32
    %10 = arith.extui %9 : i1 to i32
    %c0_i32_4 = arith.constant 0 : i32
    %11 = arith.cmpi ne, %10, %c0_i32_4 : i32
    scf.if %11 {
      %c0_5 = arith.constant 0 : index
      %c0_6 = arith.constant 0 : index
      %12 = vector.load %arg4[%c0_5, %c0_6] : memref<128x128xf32, #tpu.memory_space<vmem>>, vector<128x128xf32>
      %13 = arith.addf %12, %5 : vector<128x128xf32>
      %c0_7 = arith.constant 0 : index
      %c0_8 = arith.constant 0 : index
      %14 = vector.load %arg4[%c0_7, %c0_8] : memref<128x128xf32, #tpu.memory_space<vmem>>, vector<128x128xf32>
      tpu.vector_store %arg4[%c0_7, %c0_8], %13 {strides = array<i32>} : memref<128x128xf32, #tpu.memory_space<vmem>>, vector<128x128xf32>,
    } else {
    }
    return
  }
  func.func @transform_0(%arg0: i32, %arg1: i32) -> (i32, i32) {
    %c0_i32 = arith.constant 0 : i32
    return %arg0, %arg1 : i32, i32
  }
  func.func @transform_1(%arg0: i32, %arg1: i32) -> (i32, i32) {
    %c0_i32 = arith.constant 0 : i32
    %c0_i32_0 = arith.constant 0 : i32
    %c0_i32_1 = arith.constant 0 : i32
    return %c0_i32, %c0_i32_0 : i32, i32
  }
  func.func @transform_2(%arg0: i32, %arg1: i32) -> (i32, i32) {
    %c0_i32 = arith.constant 0 : i32
    %c0_i32_0 = arith.constant 0 : i32
    return %arg0, %c0_i32 : i32, i32
  }
}

module attributes {stable_mosaic.version = 11 : i64} {
  func.func @_propagate_final_kernel(%arg0: i32, %arg1: i32, %arg2: memref<128x128xbf16, #tpu.memory_space<vmem>>, %arg3: memref<128x128xbf16, #tpu.memory_space<vmem>>, %arg4: memref<128x128xf32, #tpu.memory_space<vmem>>, %arg5: memref<128x128xf32, #tpu.memory_space<vmem>>, %arg6: memref<128x128xf32, #tpu.memory_space<vmem>>) attributes {dimension_semantics = [#tpu.dimension_semantics<parallel>, #tpu.dimension_semantics<arbitrary>], iteration_bounds = array<i64: 1, 1>, scalar_prefetch = 0 : i64, scratch_operands = 0 : i64, tpu.core_type = #tpu.core_type<tc>, window_params = [{transform_indices = @transform_0, window_bounds = array<i64: 128, 128>}, {pipeline_mode = #tpu.pipeline_mode<synchronous>, transform_indices = @transform_1, window_bounds = array<i64: 128, 128>}, {transform_indices = @transform_2, window_bounds = array<i64: 128, 128>}, {transform_indices = @transform_3, window_bounds = array<i64: 128, 128>}, {transform_indices = @transform_4, window_bounds = array<i64: 128, 128>}]} {
    %c128_i32 = arith.constant 128 : i32
    %0 = arith.muli %arg1, %c128_i32 : i32
    %1 = tpu.assume_multiple %0, 128 : i32
    %2 = arith.index_cast %1 : i32 to index
    %c0 = arith.constant 0 : index
    %3 = vector.load %arg3[%2, %c0] : memref<128x128xbf16, #tpu.memory_space<vmem>>, vector<128x128xbf16>
    %c0_0 = arith.constant 0 : index
    %c0_1 = arith.constant 0 : index
    %4 = vector.load %arg2[%c0_0, %c0_1] : memref<128x128xbf16, #tpu.memory_space<vmem>>, vector<128x128xbf16>
    %cst = arith.constant dense<0.000000e+00> : vector<128x128xf32>
    %5 = tpu.matmul %4, %3, %cst {dimension_numbers = #tpu.dot_dimension_numbers<[1], [0], [0], [1], [0, 0, 1, 1], [], []>} : vector<128x128xbf16>, vector<128x128xbf16>, vector<128x128xf32> -> vector<128x128xf32>
    %c0_i32 = arith.constant 0 : i32
    %6 = arith.cmpi eq, %arg1, %c0_i32 : i32
    %7 = arith.extui %6 : i1 to i32
    %c0_i32_2 = arith.constant 0 : i32
    %8 = arith.cmpi ne, %7, %c0_i32_2 : i32
    scf.if %8 {
      %c0_7 = arith.constant 0 : index
      %c0_8 = arith.constant 0 : index
      %15 = vector.load %arg6[%c0_7, %c0_8] : memref<128x128xf32, #tpu.memory_space<vmem>>, vector<128x128xf32>
      tpu.vector_store %arg6[%c0_7, %c0_8], %5 {strides = array<i32>} : memref<128x128xf32, #tpu.memory_space<vmem>>, vector<128x128xf32>,
    } else {
    }
    %c0_i32_3 = arith.constant 0 : i32
    %9 = arith.cmpi sgt, %arg1, %c0_i32_3 : i32
    %10 = arith.extui %9 : i1 to i32
    %c0_i32_4 = arith.constant 0 : i32
    %11 = arith.cmpi ne, %10, %c0_i32_4 : i32
    scf.if %11 {
      %c0_7 = arith.constant 0 : index
      %c0_8 = arith.constant 0 : index
      %15 = vector.load %arg6[%c0_7, %c0_8] : memref<128x128xf32, #tpu.memory_space<vmem>>, vector<128x128xf32>
      %16 = arith.addf %15, %5 : vector<128x128xf32>
      %c0_9 = arith.constant 0 : index
      %c0_10 = arith.constant 0 : index
      %17 = vector.load %arg6[%c0_9, %c0_10] : memref<128x128xf32, #tpu.memory_space<vmem>>, vector<128x128xf32>
      tpu.vector_store %arg6[%c0_9, %c0_10], %16 {strides = array<i32>} : memref<128x128xf32, #tpu.memory_space<vmem>>, vector<128x128xf32>,
    } else {
    }
    %c0_i32_5 = arith.constant 0 : i32
    %12 = arith.cmpi eq, %arg1, %c0_i32_5 : i32
    %13 = arith.extui %12 : i1 to i32
    %c0_i32_6 = arith.constant 0 : i32
    %14 = arith.cmpi ne, %13, %c0_i32_6 : i32
    scf.if %14 {
      %c0_7 = arith.constant 0 : index
      %c0_8 = arith.constant 0 : index
      %15 = vector.load %arg6[%c0_7, %c0_8] : memref<128x128xf32, #tpu.memory_space<vmem>>, vector<128x128xf32>
      %c0_9 = arith.constant 0 : index
      %c0_10 = arith.constant 0 : index
      %16 = vector.load %arg4[%c0_9, %c0_10] : memref<128x128xf32, #tpu.memory_space<vmem>>, vector<128x128xf32>
      %cst_11 = arith.constant 5.000000e-01 : f32
      %17 = vector.broadcast %cst_11 : f32 to vector<128x128xf32>
      %18 = arith.mulf %17, %16 : vector<128x128xf32>
      %c0_12 = arith.constant 0 : index
      %c0_13 = arith.constant 0 : index
      %19 = vector.load %arg5[%c0_12, %c0_13] : memref<128x128xf32, #tpu.memory_space<vmem>>, vector<128x128xf32>
      %20 = arith.addf %19, %15 : vector<128x128xf32>
      %cst_14 = arith.constant 0.166666672 : f32
      %21 = vector.broadcast %cst_14 : f32 to vector<128x128xf32>
      %22 = arith.mulf %21, %20 : vector<128x128xf32>
      %23 = arith.addf %18, %22 : vector<128x128xf32>
      %c0_15 = arith.constant 0 : index
      %c0_16 = arith.constant 0 : index
      %24 = vector.load %arg6[%c0_15, %c0_16] : memref<128x128xf32, #tpu.memory_space<vmem>>, vector<128x128xf32>
      tpu.vector_store %arg6[%c0_15, %c0_16], %23 {strides = array<i32>} : memref<128x128xf32, #tpu.memory_space<vmem>>, vector<128x128xf32>,
    } else {
    }
    return
  }
  func.func @transform_0(%arg0: i32, %arg1: i32) -> (i32, i32) {
    %c0_i32 = arith.constant 0 : i32
    return %arg0, %arg1 : i32, i32
  }
  func.func @transform_1(%arg0: i32, %arg1: i32) -> (i32, i32) {
    %c0_i32 = arith.constant 0 : i32
    %c0_i32_0 = arith.constant 0 : i32
    %c0_i32_1 = arith.constant 0 : i32
    return %c0_i32, %c0_i32_0 : i32, i32
  }
  func.func @transform_2(%arg0: i32, %arg1: i32) -> (i32, i32) {
    %c0_i32 = arith.constant 0 : i32
    %c0_i32_0 = arith.constant 0 : i32
    return %arg0, %c0_i32 : i32, i32
  }
  func.func @transform_3(%arg0: i32, %arg1: i32) -> (i32, i32) {
    %c0_i32 = arith.constant 0 : i32
    %c0_i32_0 = arith.constant 0 : i32
    return %arg0, %c0_i32 : i32, i32
  }
  func.func @transform_4(%arg0: i32, %arg1: i32) -> (i32, i32) {
    %c0_i32 = arith.constant 0 : i32
    %c0_i32_0 = arith.constant 0 : i32
    return %arg0, %c0_i32 : i32, i32
  }
}

</mosaic_0001>

<bundles_post_ra>
// kernel: lightgcn_forward.12
= control target key start
LH: loop header
LB: loop body
LE: loop exit
PB: predicated region body
PF: predicated region fallthrough
CT: control target
= control target key end

     0   :  { %s757_s0 = inlined_call_operand.vmem [shape: f32[128,128], index: 0, kind: input, shape index: {}]   ;;  %s758_s1 = inlined_call_operand.vmem [shape: bf16[128,128], index: 1, kind: output, shape index: {}]  }
   0x1   :  { %v488_v0 = vld [vmem:[%s757_s0 + $0x10] sm:$0xff]  ;;  %v493_v1 = vld [vmem:[%s757_s0] sm:$0xff]  ;;  %v498_v2 = vld [vmem:[%s757_s0 + $0x18] sm:$0xff] }
   0x2   :  { %v26_v3 = vmul.f32 %v488_v0, %v488_v0  ;;  %v24_v4 = vmul.f32 %v493_v1, %v493_v1  ;;  %v507_v5 = vld [vmem:[%s757_s0 + $0x8] sm:$0xff]  ;;  %v27_v6 = vmul.f32 %v498_v2, %v498_v2  ;;  %v521_v9 = vld [vmem:[%s757_s0 + $0x20] sm:$0xff]  ;;  %v530_v12 = vld [vmem:[%s757_s0 + $0x38] sm:$0xff] }
   0x3   :  { %v25_v7 = vmul.f32 %v507_v5, %v507_v5  ;;  %v516_v8 = vld [vmem:[%s757_s0 + $0x28] sm:$0xff]  ;;  %v28_v11 = vmul.f32 %v521_v9, %v521_v9  ;;  %v535_v13 = vld [vmem:[%s757_s0 + $0x30] sm:$0xff]  ;;  %v31_v14 = vmul.f32 %v530_v12, %v530_v12  ;;  %v549_v17 = vld [vmem:[%s757_s0 + $0x40] sm:$0xff] }
   0x4   :  { %44 = vadd.xlane.f32.xlu1 %v26_v3  ;;  %40 = vadd.xlane.f32.xlu0 %v24_v4  ;;  %v29_v10 = vmul.f32 %v516_v8, %v516_v8  ;;  %v30_v15 = vmul.f32 %v535_v13, %v535_v13  ;;  %v544_v16 = vld [vmem:[%s757_s0 + $0x48] sm:$0xff]  ;;  %v32_v19 = vmul.f32 %v549_v17, %v549_v17  ;;  %v558_v20 = vld [vmem:[%s757_s0 + $0x58] sm:$0xff]  ;;  %v563_v21 = vld [vmem:[%s757_s0 + $0x50] sm:$0xff] }
   0x5   :  { %v33_v18 = vmul.f32 %v544_v16, %v544_v16  ;;  %v35_v22 = vmul.f32 %v558_v20, %v558_v20  ;;  %v34_v23 = vmul.f32 %v563_v21, %v563_v21  ;;  %v572_v24 = vld [vmem:[%s757_s0 + $0x68] sm:$0xff]  ;;  %v577_v25 = vld [vmem:[%s757_s0 + $0x60] sm:$0xff]  ;;  %v586_v28 = vld [vmem:[%s757_s0 + $0x78] sm:$0xff] }
   0x6   :  { %v37_v26 = vmul.f32 %v572_v24, %v572_v24  ;;  %v36_v27 = vmul.f32 %v577_v25, %v577_v25  ;;  %v591_v29 = vld [vmem:[%s757_s0 + $0x70] sm:$0xff]  ;;  %v39_v30 = vmul.f32 %v586_v28, %v586_v28 }
   0x7   :  { %v38_v31 = vmul.f32 %v591_v29, %v591_v29 }
   0x8   :  { %46 = vadd.xlane.f32.xlu1 %v27_v6  ;;  %42 = vadd.xlane.f32.xlu0 %v25_v7 }
   0xc   :  { %50 = vadd.xlane.f32.xlu1 %v29_v10  ;;  %48 = vadd.xlane.f32.xlu0 %v28_v11 }
  0x10   :  { %54 = vadd.xlane.f32.xlu1 %v31_v14  ;;  %52 = vadd.xlane.f32.xlu0 %v30_v15 }
  0x14   :  { %58 = vadd.xlane.f32.xlu1 %v33_v18  ;;  %56 = vadd.xlane.f32.xlu0 %v32_v19 }
  0x18   :  { %62 = vadd.xlane.f32.xlu1 %v35_v22  ;;  %60 = vadd.xlane.f32.xlu0 %v34_v23 }
  0x1c   :  { %66 = vadd.xlane.f32.xlu1 %v37_v26  ;;  %64 = vadd.xlane.f32.xlu0 %v36_v27 }
  0x20   :  { %70 = vadd.xlane.f32.xlu1 %v39_v30  ;;  %68 = vadd.xlane.f32.xlu0 %v38_v31 }
  0x8d   :  { %v45_v32 = vpop.xlane.xlu1 %44  ;;  %v41_v33 = vpop.xlane.xlu0 %40 }
  0x8e   :  { %411 = vrsqrt.f32 %v45_v32  ;;  %vm88_vm0 = vcmp.eq.f32.partialorder %v45_v32, inf  ;;  %vm90_vm1 = vcmp.eq.f32.partialorder %v45_v32, 0.0  ;;  %v91_v43 = vand.u32 2147483648, %v45_v32 }
  0x8f   :  { %413 = vrsqrt.f32 %v41_v33  ;;  %vm74_vm2 = vcmp.eq.f32.partialorder %v41_v33, inf  ;;  %vm76_vm3 = vcmp.eq.f32.partialorder %v41_v33, 0.0  ;;  %v77_v45 = vand.u32 2147483648, %v41_v33 }
  0x91   :  { %v47_v34 = vpop.xlane.xlu1 %46  ;;  %v43_v35 = vpop.xlane.xlu0 %42 }
  0x92   :  { %415 = vrsqrt.f32 %v47_v34  ;;  %vm95_vm4 = vcmp.eq.f32.partialorder %v47_v34, inf  ;;  %vm97_vm5 = vcmp.eq.f32.partialorder %v47_v34, 0.0  ;;  %v98_v49 = vand.u32 2147483648, %v47_v34 }
  0x93   :  { %417 = vrsqrt.f32 %v43_v35  ;;  %vm81_vm6 = vcmp.eq.f32.partialorder %v43_v35, inf  ;;  %vm83_vm7 = vcmp.eq.f32.partialorder %v43_v35, 0.0  ;;  %v84_v57 = vand.u32 2147483648, %v43_v35 }
  0x95   :  { %v597_v36 = vpop.xlane.xlu1 %50  ;;  %v599_v37 = vpop.xlane.xlu0 %48 }
  0x96   :  { %419 = vrsqrt.f32 %v597_v36  ;;  %vm109_vm8 = vcmp.eq.f32.partialorder %v597_v36, inf  ;;  %vm111_vm9 = vcmp.eq.f32.partialorder %v597_v36, 0.0  ;;  %v112_v63 = vand.u32 2147483648, %v597_v36 }
  0x97   :  { %421 = vrsqrt.f32 %v599_v37  ;;  %vm102_vm10 = vcmp.eq.f32.partialorder %v599_v37, inf  ;;  %vm104_vm11 = vcmp.eq.f32.partialorder %v599_v37, 0.0  ;;  %v105_v19 = vand.u32 2147483648, %v599_v37 }
  0x99   :  { %v603_v38 = vpop.xlane.xlu1 %54  ;;  %v605_v39 = vpop.xlane.xlu0 %52 }
  0x9a   :  { %423 = vrsqrt.f32 %v603_v38  ;;  %vm123_vm12 = vcmp.eq.f32.partialorder %v603_v38, inf  ;;  %vm125_vm13 = vcmp.eq.f32.partialorder %v603_v38, 0.0  ;;  %v126_v31 = vand.u32 2147483648, %v603_v38 }
  0x9b   :  { %v412_v40 = vpop.eup %411  ;;  %425 = vrsqrt.f32 %v605_v39  ;;  %vm116_vm14 = vcmp.eq.f32.partialorder %v605_v39, inf  ;;  %vm118_vm15 = vcmp.eq.f32.partialorder %v605_v39, 0.0 }
  0x9c   :  { %v414_v41 = vpop.eup %413  ;;  %v87_v42 = vmul.f32 %v412_v40, %v45_v32 }
  0x9d   :  { %v73_v44 = vmul.f32 %v414_v41, %v41_v33  ;;  %v609_v46 = vpop.xlane.xlu1 %58  ;;  %v611_v47 = vpop.xlane.xlu0 %56 }
  0x9e   :  { %v89_v48 = vsel %vm88_vm0, %v45_v32, %v87_v42  ;;  %427 = vrsqrt.f32 %v609_v46  ;;  %vm137_vm0 = vcmp.eq.f32.partialorder %v609_v46, inf }
  0x9f   :  { %v416_v50 = vpop.eup %415  ;;  %v92_v51 = vsel %vm90_vm1, %v91_v43, %v89_v48  ;;  %v75_v52 = vsel %vm74_vm2, %v41_v33, %v73_v44  ;;  %429 = vrsqrt.f32 %v611_v47  ;;  %v119_v43 = vand.u32 2147483648, %v605_v39 }
  0xa0   :  { %v418_v53 = vpop.eup %417  ;;  %v186_v54 = vadd.f32 1e-12, %v92_v51  ;;  %v78_v55 = vsel %vm76_vm3, %v77_v45, %v75_v52  ;;  %v94_v56 = vmul.f32 %v416_v50, %v47_v34  ;;  %vm139_vm1 = vcmp.eq.f32.partialorder %v609_v46, 0.0 }
  0xa1   :  { %v184_v58 = vadd.f32 1e-12, %v78_v55  ;;  %v80_v59 = vmul.f32 %v418_v53, %v43_v35  ;;  %v619_v60 = vpop.xlane.xlu1 %62  ;;  %v621_v61 = vpop.xlane.xlu0 %60  ;;  %vm130_vm2 = vcmp.eq.f32.partialorder %v611_v47, inf  ;;  %vm132_vm3 = vcmp.eq.f32.partialorder %v611_v47, 0.0 }
  0xa2   :  { %431 = vrcp.f32 %v186_v54  ;;  %v96_v62 = vsel %vm95_vm4, %v47_v34, %v94_v56  ;;  %v140_v54 = vand.u32 2147483648, %v609_v46  ;;  %v133_v56 = vand.u32 2147483648, %v611_v47 }
  0xa3   :  { %v420_v3 = vpop.eup %419  ;;  %433 = vrcp.f32 %v184_v58  ;;  %v99_v4 = vsel %vm97_vm5, %v98_v49, %v96_v62  ;;  %v82_v6 = vsel %vm81_vm6, %v43_v35, %v80_v59  ;;  %vm151_vm4 = vcmp.eq.f32.partialorder %v619_v60, inf }
  0xa4   :  { %v422_v7 = vpop.eup %421  ;;  %v187_v10 = vadd.f32 1e-12, %v99_v4  ;;  %v85_v11 = vsel %vm83_vm7, %v84_v57, %v82_v6  ;;  %v108_v14 = vmul.f32 %v420_v3, %v597_v36  ;;  %435 = vrsqrt.f32 %v619_v60 }
  0xa5   :  { %v185_v15 = vadd.f32 1e-12, %v85_v11  ;;  %v101_v18 = vmul.f32 %v422_v7, %v599_v37  ;;  %437 = vrsqrt.f32 %v621_v61  ;;  %v635_v22 = vpop.xlane.xlu1 %66  ;;  %v648_v32 = vpop.xlane.xlu0 %64  ;;  %vm153_vm5 = vcmp.eq.f32.partialorder %v619_v60, 0.0 }
  0xa6   :  { %439 = vrcp.f32 %v187_v10  ;;  %v110_v23 = vsel %vm109_vm8, %v597_v36, %v108_v14  ;;  %vm144_vm6 = vcmp.eq.f32.partialorder %v621_v61, inf  ;;  %vm146_vm7 = vcmp.eq.f32.partialorder %v621_v61, 0.0 }
  0xa7   :  { %v424_v26 = vpop.eup %423  ;;  %441 = vrcp.f32 %v185_v15  ;;  %v113_v27 = vsel %vm111_vm9, %v112_v63, %v110_v23  ;;  %v103_v30 = vsel %vm102_vm10, %v599_v37, %v101_v18  ;;  %v147_v23 = vand.u32 2147483648, %v621_v61 }
  0xa8   :  { %v426_v33 = vpop.eup %425  ;;  %v189_v34 = vadd.f32 1e-12, %v113_v27  ;;  %v106_v35 = vsel %vm104_vm11, %v105_v19, %v103_v30  ;;  %v122_v40 = vmul.f32 %v424_v26, %v603_v38  ;;  %443 = vrsqrt.f32 %v635_v22 }
  0xa9   :  { %v188_v41 = vadd.f32 1e-12, %v106_v35  ;;  %v115_v36 = vmul.f32 %v426_v33, %v605_v39  ;;  %v662_v37 = vpop.xlane.xlu1 %70  ;;  %vm165_vm8 = vcmp.eq.f32.partialorder %v635_v22, inf  ;;  %vm167_vm9 = vcmp.eq.f32.partialorder %v635_v22, 0.0 }
  0xaa   :  { %445 = vrcp.f32 %v189_v34  ;;  %v124_v42 = vsel %vm123_vm12, %v603_v38, %v122_v40  ;;  %v673_v38 = vpop.xlane.xlu0 %68  ;;  %vm158_vm10 = vcmp.eq.f32.partialorder %v648_v32, inf  ;;  %vm160_vm11 = vcmp.eq.f32.partialorder %v648_v32, 0.0 }
  0xab   :  { %v428_v44 = vpop.eup %427  ;;  %447 = vrcp.f32 %v188_v41  ;;  %v127_v45 = vsel %vm125_vm13, %v126_v31, %v124_v42  ;;  %v117_v48 = vsel %vm116_vm14, %v605_v39, %v115_v36  ;;  %v168_v42 = vand.u32 2147483648, %v635_v22 }
  0xac   :  { %v430_v49 = vpop.eup %429  ;;  %v191_v50 = vadd.f32 1e-12, %v127_v45  ;;  %v120_v51 = vsel %vm118_vm15, %v119_v43, %v117_v48  ;;  %v136_v52 = vmul.f32 %v428_v44, %v609_v46  ;;  %449 = vrsqrt.f32 %v648_v32 }
  0xad   :  { %v190_v53 = vadd.f32 1e-12, %v120_v51  ;;  %v129_v55 = vmul.f32 %v430_v49, %v611_v47  ;;  %451 = vrsqrt.f32 %v662_v37  ;;  %vm179_vm12 = vcmp.eq.f32.partialorder %v662_v37, inf }
  0xae   :  { %453 = vrcp.f32 %v191_v50  ;;  %v138_v39 = vsel %vm137_vm0, %v609_v46, %v136_v52  ;;  %v154_v46 = vand.u32 2147483648, %v619_v60  ;;  %vm181_vm13 = vcmp.eq.f32.partialorder %v662_v37, 0.0 }
  0xaf   :  { %v432_v57 = vpop.eup %431  ;;  %455 = vrcp.f32 %v190_v53  ;;  %v141_v58 = vsel %vm139_vm1, %v140_v54, %v138_v39  ;;  %v131_v59 = vsel %vm130_vm2, %v611_v47, %v129_v55  ;;  %v182_v54 = vand.u32 2147483648, %v662_v37 }
  0xb0   :  { %v434_v62 = vpop.eup %433  ;;  %v193_v63 = vadd.f32 1e-12, %v141_v58  ;;  %v134_v3 = vsel %vm132_vm3, %v133_v56, %v131_v59  ;;  %457 = vrsqrt.f32 %v673_v38  ;;  %v234_v15 = vmul.f32 %v432_v57, %v488_v0 }
  0xb1   :  { %v436_v4 = vpop.eup %435  ;;  %v192_v6 = vadd.f32 1e-12, %v134_v3  ;;  %v232_v27 = vmul.f32 %v434_v62, %v493_v1  ;;  %vm172_vm14 = vcmp.eq.f32.partialorder %v673_v38, inf  ;;  %v175_v3 = vand.u32 2147483648, %v673_v38 }
  0xb2   :  { %v438_v7 = vpop.eup %437  ;;  %459 = vrcp.f32 %v193_v63  ;;  %v150_v10 = vmul.f32 %v436_v4, %v619_v60  ;;  %vm174_vm15 = vcmp.eq.f32.partialorder %v673_v38, 0.0 }
  0xb3   :  { %v440_v11 = vpop.eup %439  ;;  %461 = vrcp.f32 %v192_v6  ;;  %v143_v47 = vmul.f32 %v438_v7, %v621_v61 }
  0xb4   :  { %v442_v14 = vpop.eup %441  ;;  %v235_v18 = vmul.f32 %v440_v11, %v498_v2  ;;  %v152_v19 = vsel %vm151_vm4, %v619_v60, %v150_v10 }
  0xb5   :  { %v444_v26 = vpop.eup %443  ;;  %v233_v30 = vmul.f32 %v442_v14, %v507_v5  ;;  %v155_v31 = vsel %vm153_vm5, %v154_v46, %v152_v19  ;;  %v145_v33 = vsel %vm144_vm6, %v621_v61, %v143_v47 }
  0xb6   :  { %v372_v34 = vpack.c.bf16 %v235_v18, %v234_v15  ;;  %v195_v35 = vadd.f32 1e-12, %v155_v31  ;;  %v148_v40 = vsel %vm146_vm7, %v147_v23, %v145_v33  ;;  %v164_v0 = vmul.f32 %v444_v26, %v635_v22 }
  0xb7   :  { %v446_v2 = vpop.eup %445  ;;  %v367_v41 = vpack.c.bf16 %v233_v30, %v232_v27  ;;  %v194_v36 = vadd.f32 1e-12, %v148_v40 }
  0xb8   :  { %v448_v1 = vpop.eup %447  ;;  %404 = vst [vmem:[%s758_s1 + $0x8] sm:$0xff] %v372_v34   ;;  %v237_v5 = vmul.f32 %v446_v2, %v516_v8  ;;  %463 = vrcp.f32 %v195_v35  ;;  %v166_v60 = vsel %vm165_vm8, %v635_v22, %v164_v0  ;;  %v161_v22 = vand.u32 2147483648, %v648_v32 }
  0xb9   :  { %v450_v61 = vpop.eup %449  ;;  %368 = vst [vmem:[%s758_s1] sm:$0xff] %v367_v41   ;;  %v236_v43 = vmul.f32 %v448_v1, %v521_v9  ;;  %465 = vrcp.f32 %v194_v36  ;;  %v169_v44 = vsel %vm167_vm9, %v168_v42, %v166_v60 }
  0xba   :  { %v452_v45 = vpop.eup %451  ;;  %v197_v48 = vadd.f32 1e-12, %v169_v44  ;;  %v157_v49 = vmul.f32 %v450_v61, %v648_v32 }
  0xbb   :  { %v454_v8 = vpop.eup %453  ;;  %v377_v50 = vpack.c.bf16 %v237_v5, %v236_v43  ;;  %v178_v51 = vmul.f32 %v452_v45, %v662_v37 }
  0xbc   :  { %v456_v52 = vpop.eup %455  ;;  %v239_v9 = vmul.f32 %v454_v8, %v530_v12  ;;  %467 = vrcp.f32 %v197_v48  ;;  %v159_v53 = vsel %vm158_vm10, %v648_v32, %v157_v49 }
  0xbd   :  { %v458_v55 = vpop.eup %457  ;;  %405 = vst [vmem:[%s758_s1 + $0x10] sm:$0xff] %v377_v50   ;;  %v238_v39 = vmul.f32 %v456_v52, %v535_v13  ;;  %v162_v56 = vsel %vm160_vm11, %v161_v22, %v159_v53  ;;  %v180_v57 = vsel %vm179_vm12, %v662_v37, %v178_v51 }
  0xbe   :  { %v196_v58 = vadd.f32 1e-12, %v162_v56  ;;  %v183_v59 = vsel %vm181_vm13, %v182_v54, %v180_v57  ;;  %v171_v12 = vmul.f32 %v458_v55, %v673_v38 }
  0xbf   :  { %v460_v62 = vpop.eup %459  ;;  %v382_v32 = vpack.c.bf16 %v239_v9, %v238_v39  ;;  %v199_v63 = vadd.f32 1e-12, %v183_v59 }
  0xc0   :  { %v462_v4 = vpop.eup %461  ;;  %v241_v6 = vmul.f32 %v460_v62, %v544_v16  ;;  %469 = vrcp.f32 %v196_v58  ;;  %v173_v13 = vsel %vm172_vm14, %v673_v38, %v171_v12 }
  0xc1   :  { %406 = vst [vmem:[%s758_s1 + $0x18] sm:$0xff] %v382_v32   ;;  %v240_v37 = vmul.f32 %v462_v4, %v549_v17  ;;  %471 = vrcp.f32 %v199_v63  ;;  %v176_v7 = vsel %vm174_vm15, %v175_v3, %v173_v13 }
  0xc2   :  { %v198_v10 = vadd.f32 1e-12, %v176_v7 }
  0xc3   :  { %v387_v46 = vpack.c.bf16 %v241_v6, %v240_v37 }
  0xc4   :  { %473 = vrcp.f32 %v198_v10 }
  0xc5   :  { %v464_v11 = vpop.eup %463  ;;  %407 = vst [vmem:[%s758_s1 + $0x20] sm:$0xff] %v387_v46  }
  0xc6   :  { %v466_v16 = vpop.eup %465  ;;  %v243_v47 = vmul.f32 %v464_v11, %v558_v20 }
  0xc7   :  { %v242_v38 = vmul.f32 %v466_v16, %v563_v21 }
  0xc9   :  { %v468_v14 = vpop.eup %467  ;;  %v392_v15 = vpack.c.bf16 %v243_v47, %v242_v38 }
  0xca   :  { %v245_v17 = vmul.f32 %v468_v14, %v572_v24 }
  0xcb   :  { %408 = vst [vmem:[%s758_s1 + $0x28] sm:$0xff] %v392_v15  }
  0xcd   :  { %v470_v18 = vpop.eup %469 }
  0xce   :  { %v472_v19 = vpop.eup %471  ;;  %v244_v23 = vmul.f32 %v470_v18, %v577_v25 }
  0xcf   :  { %v247_v27 = vmul.f32 %v472_v19, %v586_v28 }
  0xd0   :  { %v397_v26 = vpack.c.bf16 %v245_v17, %v244_v23 }
  0xd1   :  { %v474_v30 = vpop.eup %473 }
  0xd2   :  { %409 = vst [vmem:[%s758_s1 + $0x30] sm:$0xff] %v397_v26   ;;  %v246_v20 = vmul.f32 %v474_v30, %v591_v29 }
  0xd4   :  { %v402_v21 = vpack.c.bf16 %v247_v27, %v246_v20 }
  0xd6   :  { %410 = vst [vmem:[%s758_s1 + $0x38] sm:$0xff] %v402_v21  }

// kernel: lightgcn_forward.15
= control target key start
LH: loop header
LB: loop body
LE: loop exit
PB: predicated region body
PF: predicated region fallthrough
CT: control target
= control target key end

     0   :  { %s527_s1 = inlined_call_operand.vmem [shape: bf16[128,128], index: 1, kind: input, shape index: {}]   ;;  %s528_s0 = inlined_call_operand.vmem [shape: bf16[128,128], index: 0, kind: input, shape index: {}]   ;;  %s529_s2 = inlined_call_operand.vmem [shape: f32[128,128], index: 2, kind: output, shape index: {}]  }
   0x1   :  { %v400_v0 = vld [vmem:[%s527_s1 + $0x38] sm:$0xff]   ;;  %v401_v1 = vld [vmem:[%s527_s1 + $0x30] sm:$0xff]   ;;  %v402_v2 = vld [vmem:[%s527_s1 + $0x28] sm:$0xff]  }
   0x2   :  { %352 = vmatprep.subr.bf16.mxu0 %v400_v0  ;;  %384 = vmatprep.subr.bf16.mxu1 %v400_v0  ;;  %v403_v3 = vld [vmem:[%s527_s1 + $0x20] sm:$0xff]   ;;  %v404_v6 = vld [vmem:[%s527_s1 + $0x18] sm:$0xff]   ;;  %v405_v7 = vld [vmem:[%s527_s1 + $0x10] sm:$0xff]  }
   0x3   :  { %353 = vmatpush3.bf16.msra.mxu0 %v400_v0  ;;  %392 = vmatpush3.bf16.msra.mxu1 %v400_v0  ;;  %v408_v4 = vld [vmem:[%s528_s0] sm:$0xff]   ;;  %v406_v8 = vld [vmem:[%s527_s1 + $0x8] sm:$0xff]   ;;  %v412_v12 = vld [vmem:[%s528_s0 + $0x10] sm:$0xff]  }
   0x4   :  { %354 = vmatprep.subr.bf16.mxu0 %v401_v1  ;;  %385 = vmatprep.subr.bf16.mxu1 %v401_v1  ;;  %v409_v5 = vld [vmem:[%s528_s0 + $0x20] sm:$0xff]   ;;  %v410_v10 = vld [vmem:[%s528_s0 + $0x8] sm:$0xff]   ;;  %v413_v13 = vld [vmem:[%s528_s0 + $0x30] sm:$0xff]  }
   0x5   :  { %368 = vmatprep.mubr.bf16.mxu0 %v408_v4  ;;  %376 = vmatprep.mubr.bf16.mxu1 %v409_v5  ;;  %v407_v9 = vld [vmem:[%s527_s1] sm:$0xff]   ;;  %v411_v11 = vld [vmem:[%s528_s0 + $0x28] sm:$0xff]   ;;  %v414_v14 = vld [vmem:[%s528_s0 + $0x18] sm:$0xff]  }
   0x6   :  { %v415_v15 = vld [vmem:[%s528_s0 + $0x38] sm:$0xff]  }
   0x7   :  { %355 = vmatpush3.bf16.msra.mxu0 %v401_v1  ;;  %393 = vmatpush3.bf16.msra.mxu1 %v401_v1 }
   0x8   :  { %356 = vmatprep.subr.bf16.mxu0 %v402_v2  ;;  %386 = vmatprep.subr.bf16.mxu1 %v402_v2 }
   0xb   :  { %357 = vmatpush3.bf16.msra.mxu0 %v402_v2  ;;  %394 = vmatpush3.bf16.msra.mxu1 %v402_v2 }
   0xc   :  { %358 = vmatprep.subr.bf16.mxu0 %v403_v3  ;;  %387 = vmatprep.subr.bf16.mxu1 %v403_v3 }
   0xf   :  { %359 = vmatpush3.bf16.msra.mxu0 %v403_v3  ;;  %395 = vmatpush3.bf16.msra.mxu1 %v403_v3 }
  0x10   :  { %360 = vmatprep.subr.bf16.mxu0 %v404_v6  ;;  %388 = vmatprep.subr.bf16.mxu1 %v404_v6 }
  0x13   :  { %361 = vmatpush3.bf16.msra.mxu0 %v404_v6  ;;  %396 = vmatpush3.bf16.msra.mxu1 %v404_v6 }
  0x14   :  { %362 = vmatprep.subr.bf16.mxu0 %v405_v7  ;;  %389 = vmatprep.subr.bf16.mxu1 %v405_v7 }
  0x17   :  { %363 = vmatpush3.bf16.msra.mxu0 %v405_v7  ;;  %397 = vmatpush3.bf16.msra.mxu1 %v405_v7 }
  0x18   :  { %364 = vmatprep.subr.bf16.mxu0 %v406_v8  ;;  %390 = vmatprep.subr.bf16.mxu1 %v406_v8 }
  0x1b   :  { %365 = vmatpush3.bf16.msra.mxu0 %v406_v8  ;;  %398 = vmatpush3.bf16.msra.mxu1 %v406_v8 }
  0x1c   :  { %366 = vmatprep.subr.bf16.mxu0 %v407_v9  ;;  %391 = vmatprep.subr.bf16.mxu1 %v407_v9 }
  0x1f   :  { %367 = vmatpush3.bf16.msra.mxu0 %v407_v9  ;;  %399 = vmatpush3.bf16.msra.mxu1 %v407_v9 }
  0x22   :  { %369 = vmatmul.mubr.bf16.vlgmr.msra.gmra.mxu0 %v410_v10  ;;  %377 = vmatmul.mubr.bf16.vlgmr.msra.gmra.mxu1 %v411_v11 }
  0x23   :  { %372 = vmatprep.mubr.bf16.mxu0 %v412_v12  ;;  %380 = vmatprep.mubr.bf16.mxu1 %v413_v13 }
  0x2a   :  { %373 = vmatmul.mubr.bf16.gmra.mxu0 %v414_v14  ;;  %381 = vmatmul.mubr.bf16.gmra.mxu1 %v415_v15 }
  0xe2   :  { %v370_v16 = vpop.f32.mrf.mxu0  ;;  %v378_v17 = vpop.f32.mrf.mxu1 }
  0xe3   :  { %248 = vst [vmem:[%s529_s2 + $0x10] sm:$0xff] %v370_v16  ;;  %256 = vst [vmem:[%s529_s2 + $0x50] sm:$0xff] %v378_v17 }
  0xe4   :  { %v179_v18 = vpop.f32.mrf.mxu0  ;;  %v211_v19 = vpop.f32.mrf.mxu1 }
  0xe5   :  { %246 = vst [vmem:[%s529_s2] sm:$0xff] %v179_v18  ;;  %254 = vst [vmem:[%s529_s2 + $0x40] sm:$0xff] %v211_v19 }
  0xe6   :  { %v371_v20 = vpop.f32.mrf.mxu0  ;;  %v379_v21 = vpop.f32.mrf.mxu1 }
  0xe7   :  { %249 = vst [vmem:[%s529_s2 + $0x18] sm:$0xff] %v371_v20  ;;  %257 = vst [vmem:[%s529_s2 + $0x58] sm:$0xff] %v379_v21 }
  0xe8   :  { %v182_v22 = vpop.f32.mrf.mxu0  ;;  %v214_v23 = vpop.f32.mrf.mxu1 }
  0xe9   :  { %247 = vst [vmem:[%s529_s2 + $0x8] sm:$0xff] %v182_v22  ;;  %255 = vst [vmem:[%s529_s2 + $0x48] sm:$0xff] %v214_v23 }
  0xea   :  { %v374_v24 = vpop.f32.mrf.mxu0  ;;  %v382_v25 = vpop.f32.mrf.mxu1 }
  0xeb   :  { %252 = vst [vmem:[%s529_s2 + $0x30] sm:$0xff] %v374_v24  ;;  %260 = vst [vmem:[%s529_s2 + $0x70] sm:$0xff] %v382_v25 }
  0xec   :  { %v195_v26 = vpop.f32.mrf.mxu0  ;;  %v227_v27 = vpop.f32.mrf.mxu1 }
  0xed   :  { %250 = vst [vmem:[%s529_s2 + $0x20] sm:$0xff] %v195_v26  ;;  %258 = vst [vmem:[%s529_s2 + $0x60] sm:$0xff] %v227_v27 }
  0xee   :  { %v375_v28 = vpop.f32.mrf.mxu0  ;;  %v383_v29 = vpop.f32.mrf.mxu1 }
  0xef   :  { %253 = vst [vmem:[%s529_s2 + $0x38] sm:$0xff] %v375_v28  ;;  %261 = vst [vmem:[%s529_s2 + $0x78] sm:$0xff] %v383_v29 }
  0xf0   :  { %v198_v30 = vpop.f32.mrf.mxu0  ;;  %v230_v31 = vpop.f32.mrf.mxu1 }
  0xf1   :  { %251 = vst [vmem:[%s529_s2 + $0x28] sm:$0xff] %v198_v30  ;;  %259 = vst [vmem:[%s529_s2 + $0x68] sm:$0xff] %v230_v31 }

// kernel: lightgcn_forward.23
= control target key start
LH: loop header
LB: loop body
LE: loop exit
PB: predicated region body
PF: predicated region fallthrough
CT: control target
= control target key end

     0   :  { %s770_s1 = inlined_call_operand.vmem [shape: bf16[128,128], index: 1, kind: input, shape index: {}]   ;;  %s771_s0 = inlined_call_operand.vmem [shape: bf16[128,128], index: 0, kind: input, shape index: {}]   ;;  %s772_s2 = inlined_call_operand.vmem [shape: f32[128,128], index: 2, kind: input, shape index: {}]   ;;  %s773_s3 = inlined_call_operand.vmem [shape: f32[128,128], index: 3, kind: input, shape index: {}]   ;;  %s774_s4 = inlined_call_operand.vmem [shape: f32[128,128], index: 4, kind: output, shape index: {}]  }
   0x1   :  { %v537_v0 = vld [vmem:[%s770_s1 + $0x38] sm:$0xff]   ;;  %v538_v1 = vld [vmem:[%s770_s1 + $0x30] sm:$0xff]   ;;  %v539_v2 = vld [vmem:[%s770_s1 + $0x28] sm:$0xff]  }
   0x2   :  { %489 = vmatprep.subr.bf16.mxu0 %v537_v0  ;;  %521 = vmatprep.subr.bf16.mxu1 %v537_v0  ;;  %v540_v3 = vld [vmem:[%s770_s1 + $0x20] sm:$0xff]   ;;  %v541_v6 = vld [vmem:[%s770_s1 + $0x18] sm:$0xff]   ;;  %v542_v7 = vld [vmem:[%s770_s1 + $0x10] sm:$0xff]  }
   0x3   :  { %490 = vmatpush3.bf16.msra.mxu0 %v537_v0  ;;  %529 = vmatpush3.bf16.msra.mxu1 %v537_v0  ;;  %v545_v4 = vld [vmem:[%s771_s0] sm:$0xff]   ;;  %v543_v8 = vld [vmem:[%s770_s1 + $0x8] sm:$0xff]   ;;  %v549_v12 = vld [vmem:[%s771_s0 + $0x10] sm:$0xff]  }
   0x4   :  { %491 = vmatprep.subr.bf16.mxu0 %v538_v1  ;;  %522 = vmatprep.subr.bf16.mxu1 %v538_v1  ;;  %v546_v5 = vld [vmem:[%s771_s0 + $0x20] sm:$0xff]   ;;  %v547_v10 = vld [vmem:[%s771_s0 + $0x8] sm:$0xff]   ;;  %v550_v13 = vld [vmem:[%s771_s0 + $0x30] sm:$0xff]  }
   0x5   :  { %505 = vmatprep.mubr.bf16.mxu0 %v545_v4  ;;  %513 = vmatprep.mubr.bf16.mxu1 %v546_v5  ;;  %v544_v9 = vld [vmem:[%s770_s1] sm:$0xff]   ;;  %v548_v11 = vld [vmem:[%s771_s0 + $0x28] sm:$0xff]   ;;  %v551_v14 = vld [vmem:[%s771_s0 + $0x18] sm:$0xff]  }
   0x6   :  { %v552_v15 = vld [vmem:[%s771_s0 + $0x38] sm:$0xff]   ;;  %v341_v16 = vld [vmem:[%s772_s2 + $0x10] sm:$0xff]  ;;  %v339_v20 = vld [vmem:[%s772_s2] sm:$0xff] }
   0x7   :  { %492 = vmatpush3.bf16.msra.mxu0 %v538_v1  ;;  %530 = vmatpush3.bf16.msra.mxu1 %v538_v1  ;;  %v373_v17 = vld [vmem:[%s773_s3 + $0x10] sm:$0xff]  ;;  %v347_v21 = vld [vmem:[%s772_s2 + $0x40] sm:$0xff]  ;;  %v357_v26 = vmul.f32 0.5, %v341_v16  ;;  %v342_v30 = vld [vmem:[%s772_s2 + $0x18] sm:$0xff]  ;;  %v355_v34 = vmul.f32 0.5, %v339_v20 }
   0x8   :  { %493 = vmatprep.subr.bf16.mxu0 %v539_v2  ;;  %523 = vmatprep.subr.bf16.mxu1 %v539_v2  ;;  %v349_v18 = vld [vmem:[%s772_s2 + $0x50] sm:$0xff]  ;;  %v371_v24 = vld [vmem:[%s773_s3] sm:$0xff]  ;;  %v350_v31 = vld [vmem:[%s772_s2 + $0x58] sm:$0xff]  ;;  %v363_v36 = vmul.f32 0.5, %v347_v21  ;;  %v358_v46 = vmul.f32 0.5, %v342_v30 }
   0x9   :  { %v381_v19 = vld [vmem:[%s773_s3 + $0x50] sm:$0xff]  ;;  %v379_v25 = vld [vmem:[%s773_s3 + $0x40] sm:$0xff]  ;;  %v365_v28 = vmul.f32 0.5, %v349_v18  ;;  %v340_v32 = vld [vmem:[%s772_s2 + $0x8] sm:$0xff]  ;;  %v366_v48 = vmul.f32 0.5, %v350_v31 }
   0xa   :  { %v374_v37 = vld [vmem:[%s773_s3 + $0x18] sm:$0xff]  ;;  %v348_v43 = vld [vmem:[%s772_s2 + $0x48] sm:$0xff]  ;;  %v345_v44 = vld [vmem:[%s772_s2 + $0x30] sm:$0xff]  ;;  %v356_v49 = vmul.f32 0.5, %v340_v32 }
   0xb   :  { %494 = vmatpush3.bf16.msra.mxu0 %v539_v2  ;;  %531 = vmatpush3.bf16.msra.mxu1 %v539_v2  ;;  %v382_v38 = vld [vmem:[%s773_s3 + $0x58] sm:$0xff]  ;;  %v372_v50 = vld [vmem:[%s773_s3 + $0x8] sm:$0xff]  ;;  %v353_v56 = vld [vmem:[%s772_s2 + $0x70] sm:$0xff]  ;;  %v364_v61 = vmul.f32 0.5, %v348_v43  ;;  %v361_v62 = vmul.f32 0.5, %v345_v44 }
   0xc   :  { %495 = vmatprep.subr.bf16.mxu0 %v540_v3  ;;  %524 = vmatprep.subr.bf16.mxu1 %v540_v3  ;;  %v380_v51 = vld [vmem:[%s773_s3 + $0x48] sm:$0xff]  ;;  %v377_v63 = vld [vmem:[%s773_s3 + $0x30] sm:$0xff]  ;;  %v343_v5 = vld [vmem:[%s772_s2 + $0x20] sm:$0xff] }
   0xd   :  { %v385_v0 = vld [vmem:[%s773_s3 + $0x70] sm:$0xff]  ;;  %v346_v18 = vld [vmem:[%s772_s2 + $0x38] sm:$0xff]  ;;  %v344_v32 = vld [vmem:[%s772_s2 + $0x28] sm:$0xff] }
   0xf   :  { %496 = vmatpush3.bf16.msra.mxu0 %v540_v3  ;;  %532 = vmatpush3.bf16.msra.mxu1 %v540_v3 }
  0x10   :  { %497 = vmatprep.subr.bf16.mxu0 %v541_v6  ;;  %525 = vmatprep.subr.bf16.mxu1 %v541_v6 }
  0x13   :  { %498 = vmatpush3.bf16.msra.mxu0 %v541_v6  ;;  %533 = vmatpush3.bf16.msra.mxu1 %v541_v6  ;;  %v375_v6 = vld [vmem:[%s773_s3 + $0x20] sm:$0xff] }
  0x14   :  { %499 = vmatprep.subr.bf16.mxu0 %v542_v7  ;;  %526 = vmatprep.subr.bf16.mxu1 %v542_v7 }
  0x17   :  { %500 = vmatpush3.bf16.msra.mxu0 %v542_v7  ;;  %534 = vmatpush3.bf16.msra.mxu1 %v542_v7  ;;  %v351_v7 = vld [vmem:[%s772_s2 + $0x60] sm:$0xff] }
  0x18   :  { %501 = vmatprep.subr.bf16.mxu0 %v543_v8  ;;  %527 = vmatprep.subr.bf16.mxu1 %v543_v8 }
  0x1b   :  { %502 = vmatpush3.bf16.msra.mxu0 %v543_v8  ;;  %535 = vmatpush3.bf16.msra.mxu1 %v543_v8 }
  0x1c   :  { %503 = vmatprep.subr.bf16.mxu0 %v544_v9  ;;  %528 = vmatprep.subr.bf16.mxu1 %v544_v9 }
  0x1f   :  { %504 = vmatpush3.bf16.msra.mxu0 %v544_v9  ;;  %536 = vmatpush3.bf16.msra.mxu1 %v544_v9 }
  0x22   :  { %506 = vmatmul.mubr.bf16.vlgmr.msra.gmra.mxu0 %v547_v10  ;;  %514 = vmatmul.mubr.bf16.vlgmr.msra.gmra.mxu1 %v548_v11 }
  0x23   :  { %509 = vmatprep.mubr.bf16.mxu0 %v549_v12  ;;  %517 = vmatprep.mubr.bf16.mxu1 %v550_v13  ;;  %v369_v12 = vmul.f32 0.5, %v353_v56  ;;  %v383_v13 = vld [vmem:[%s773_s3 + $0x60] sm:$0xff] }
  0x2a   :  { %510 = vmatmul.mubr.bf16.gmra.mxu0 %v551_v14  ;;  %518 = vmatmul.mubr.bf16.gmra.mxu1 %v552_v15 }
  0xe2   :  { %v507_v22 = vpop.f32.mrf.mxu0  ;;  %v515_v23 = vpop.f32.mrf.mxu1 }
  0xe3   :  { %v389_v27 = vadd.f32 %v507_v22, %v373_v17  ;;  %v397_v29 = vadd.f32 %v515_v23, %v381_v19  ;;  %v354_v19 = vld [vmem:[%s772_s2 + $0x78] sm:$0xff]  ;;  %v359_v23 = vmul.f32 0.5, %v343_v5 }
  0xe4   :  { %v185_v33 = vpop.f32.mrf.mxu0  ;;  %v217_v35 = vpop.f32.mrf.mxu1 }
  0xe5   :  { %v405_v39 = vmul.f32 0.16666667, %v389_v27  ;;  %v413_v40 = vmul.f32 0.16666667, %v397_v29  ;;  %v387_v41 = vadd.f32 %v371_v24, %v185_v33  ;;  %v395_v42 = vadd.f32 %v379_v25, %v217_v35  ;;  %v386_v27 = vld [vmem:[%s773_s3 + $0x78] sm:$0xff]  ;;  %v352_v33 = vld [vmem:[%s772_s2 + $0x68] sm:$0xff] }
  0xe6   :  { %v508_v45 = vpop.f32.mrf.mxu0  ;;  %v516_v47 = vpop.f32.mrf.mxu1  ;;  %v367_v25 = vmul.f32 0.5, %v351_v7 }
  0xe7   :  { %v421_v52 = vadd.f32 %v405_v39, %v357_v26  ;;  %v429_v53 = vadd.f32 %v413_v40, %v365_v28  ;;  %v403_v54 = vmul.f32 0.16666667, %v387_v41  ;;  %v411_v55 = vmul.f32 0.16666667, %v395_v42  ;;  %v378_v26 = vld [vmem:[%s773_s3 + $0x38] sm:$0xff]  ;;  %v376_v40 = vld [vmem:[%s773_s3 + $0x28] sm:$0xff] }
  0xe8   :  { %v390_v57 = vadd.f32 %v508_v45, %v374_v37  ;;  %v398_v58 = vadd.f32 %v516_v47, %v382_v38  ;;  %v188_v59 = vpop.f32.mrf.mxu0  ;;  %v220_v60 = vpop.f32.mrf.mxu1  ;;  %v362_v37 = vmul.f32 0.5, %v346_v18  ;;  %v370_v39 = vmul.f32 0.5, %v354_v19  ;;  %v384_v41 = vld [vmem:[%s773_s3 + $0x68] sm:$0xff] }
  0xe9   :  { %437 = vst [vmem:[%s774_s4 + $0x10] sm:$0xff] %v421_v52  ;;  %445 = vst [vmem:[%s774_s4 + $0x50] sm:$0xff] %v429_v53  ;;  %v419_v1 = vadd.f32 %v403_v54, %v355_v34  ;;  %v427_v2 = vadd.f32 %v411_v55, %v363_v36  ;;  %v388_v3 = vadd.f32 %v372_v50, %v188_v59 }
  0xea   :  { %v396_v4 = vadd.f32 %v380_v51, %v220_v60  ;;  %v406_v8 = vmul.f32 0.16666667, %v390_v57  ;;  %v414_v9 = vmul.f32 0.16666667, %v398_v58  ;;  %v511_v10 = vpop.f32.mrf.mxu0  ;;  %v519_v11 = vpop.f32.mrf.mxu1  ;;  %v368_v51 = vmul.f32 0.5, %v352_v33 }
  0xeb   :  { %435 = vst [vmem:[%s774_s4] sm:$0xff] %v419_v1  ;;  %443 = vst [vmem:[%s774_s4 + $0x40] sm:$0xff] %v427_v2  ;;  %v404_v14 = vmul.f32 0.16666667, %v388_v3  ;;  %v393_v16 = vadd.f32 %v511_v10, %v377_v63  ;;  %v401_v17 = vadd.f32 %v519_v11, %v385_v0 }
  0xec   :  { %v412_v15 = vmul.f32 0.16666667, %v396_v4  ;;  %v422_v20 = vadd.f32 %v406_v8, %v358_v46  ;;  %v430_v21 = vadd.f32 %v414_v9, %v366_v48  ;;  %v201_v22 = vpop.f32.mrf.mxu0  ;;  %v233_v24 = vpop.f32.mrf.mxu1 }
  0xed   :  { %v420_v28 = vadd.f32 %v404_v14, %v356_v49  ;;  %v409_v30 = vmul.f32 0.16666667, %v393_v16  ;;  %v417_v31 = vmul.f32 0.16666667, %v401_v17  ;;  %v391_v34 = vadd.f32 %v375_v6, %v201_v22 }
  0xee   :  { %v428_v29 = vadd.f32 %v412_v15, %v364_v61  ;;  %438 = vst [vmem:[%s774_s4 + $0x18] sm:$0xff] %v422_v20  ;;  %446 = vst [vmem:[%s774_s4 + $0x58] sm:$0xff] %v430_v21  ;;  %v399_v35 = vadd.f32 %v383_v13, %v233_v24  ;;  %v512_v36 = vpop.f32.mrf.mxu0  ;;  %v520_v38 = vpop.f32.mrf.mxu1  ;;  %v360_v49 = vmul.f32 0.5, %v344_v32 }
  0xef   :  { %436 = vst [vmem:[%s774_s4 + $0x8] sm:$0xff] %v420_v28  ;;  %v425_v42 = vadd.f32 %v409_v30, %v361_v62  ;;  %v433_v43 = vadd.f32 %v417_v31, %v369_v12  ;;  %v394_v44 = vadd.f32 %v512_v36, %v378_v26  ;;  %v402_v45 = vadd.f32 %v520_v38, %v386_v27 }
  0xf0   :  { %444 = vst [vmem:[%s774_s4 + $0x48] sm:$0xff] %v428_v29  ;;  %v407_v46 = vmul.f32 0.16666667, %v391_v34  ;;  %v415_v47 = vmul.f32 0.16666667, %v399_v35  ;;  %v204_v48 = vpop.f32.mrf.mxu0  ;;  %v236_v50 = vpop.f32.mrf.mxu1 }
  0xf1   :  { %441 = vst [vmem:[%s774_s4 + $0x30] sm:$0xff] %v425_v42  ;;  %449 = vst [vmem:[%s774_s4 + $0x70] sm:$0xff] %v433_v43  ;;  %v410_v52 = vmul.f32 0.16666667, %v394_v44  ;;  %v418_v53 = vmul.f32 0.16666667, %v402_v45  ;;  %v392_v54 = vadd.f32 %v376_v40, %v204_v48  ;;  %v400_v55 = vadd.f32 %v384_v41, %v236_v50 }
  0xf2   :  { %v423_v56 = vadd.f32 %v407_v46, %v359_v23  ;;  %v431_v57 = vadd.f32 %v415_v47, %v367_v25 }
  0xf3   :  { %v426_v58 = vadd.f32 %v410_v52, %v362_v37  ;;  %v434_v59 = vadd.f32 %v418_v53, %v370_v39  ;;  %v408_v60 = vmul.f32 0.16666667, %v392_v54  ;;  %v416_v61 = vmul.f32 0.16666667, %v400_v55 }
  0xf4   :  { %439 = vst [vmem:[%s774_s4 + $0x20] sm:$0xff] %v423_v56  ;;  %447 = vst [vmem:[%s774_s4 + $0x60] sm:$0xff] %v431_v57 }
  0xf5   :  { %442 = vst [vmem:[%s774_s4 + $0x38] sm:$0xff] %v426_v58  ;;  %450 = vst [vmem:[%s774_s4 + $0x78] sm:$0xff] %v434_v59  ;;  %v424_v62 = vadd.f32 %v408_v60, %v360_v49  ;;  %v432_v63 = vadd.f32 %v416_v61, %v368_v51 }
  0xf7   :  { %440 = vst [vmem:[%s774_s4 + $0x28] sm:$0xff] %v424_v62  ;;  %448 = vst [vmem:[%s774_s4 + $0x68] sm:$0xff] %v432_v63 }

</bundles_post_ra>
